<compile_context>
chip_gen: v7x
topology: tpu7x:2x2x1
jax: 0.10.0
libtpu: 0.0.40
codegen_flags: <defaults>
</compile_context>

<pallas_src>
import functools
from typing import NamedTuple, Optional

import jax
import jax.numpy as jnp
from jax import lax
from jax.experimental import pallas as pl
from jax.experimental.pallas import tpu as pltpu


def _round_up(x: int, m: int) -> int:
    return ((x + m - 1) // m) * m


def _vq_kernel(x_ref, cb_ref, c2h_ref, *rest, matmul_dtype, fuse_gather):
    # x_ref:   (1, C, T)   tile of z_e in (B, C, H*W) layout
    # cb_ref:  (K, C)      codebook, pre-cast to matmul_dtype
    # c2h_ref: (K, 1)      0.5 * ||c_k||^2, float32
    if fuse_gather:
        cbt_ref, zq_ref, idx_ref = rest          # cbt_ref: (C, K) float32
    else:
        (idx_ref,) = rest

    x = x_ref[0]                                                   # (C, T)
    k = cb_ref.shape[0]

    # cross[k, t] = c_k . z_t  on the MXU with f32 accumulation.
    cross = jnp.dot(cb_ref[...], x.astype(matmul_dtype),
                    preferred_element_type=jnp.float32)            # (K, T)
    # ||z||^2 is constant per pixel -> does not affect the argmin.
    dist = c2h_ref[...] - cross                                    # (K, T)

    min_d = jnp.min(dist, axis=0, keepdims=True)                   # (1, T)
    iota = lax.broadcasted_iota(jnp.int32, dist.shape, 0)          # (K, T)
    # first-occurrence tie-break (matches torch.argmin)
    idx = jnp.min(jnp.where(dist == min_d, iota, k), axis=0, keepdims=True)
    idx = jnp.minimum(idx, k - 1)       # NaN guard: never emit out-of-range code
    idx_ref[0] = idx.astype(jnp.int32)                             # lane-dense store

    if fuse_gather:
        # Exact f32 one-hot gather; result is already channel-major (NCHW).
        onehot = (iota == idx).astype(jnp.float32)                 # (K, T)
        zq = jnp.dot(cbt_ref[...], onehot,
                     preferred_element_type=jnp.float32)           # (C, T)
        zq_ref[0] = zq.astype(zq_ref.dtype)


def _max_tile_hw(hw, c, k, tile_target, vmem_budget_bytes=20 * 1024 * 1024):
    """Largest lane tile (multiple of 128) whose working set fits the budget."""
    tile = max(128, min(_round_up(tile_target, 128), _round_up(hw, 128)))

    def working_set(t):
        io = 2 * (c * t * 4) * 2 + 2 * (t * 4)      # double-buffered x in, z_q out, idx out
        cb = 2 * (k * c * 4) + k * 4                # codebook (+ transpose) + norms
        tmp = 4 * (k * t * 4)                       # (K, T) f32 intermediates
        return io + cb + tmp

    while tile > 128 and working_set(tile) > vmem_budget_bytes:
        tile -= 128
    return tile


def _pick_tile_hw(hw, max_tile):
    """Prefer a tile that divides hw exactly (avoids a padded HBM copy of z_e);
    never drop below 512 lanes for that, per-step/store efficiency falls off."""
    t = max_tile
    divisor_tile = None
    while t >= 128:
        if hw % t == 0:
            divisor_tile = t
            break
        t -= 128
    if divisor_tile is not None and (divisor_tile >= 512 or divisor_tile >= max_tile):
        return divisor_tile, hw
    return max_tile, _round_up(hw, max_tile)


@functools.partial(jax.jit, static_argnames=("tile_target", "matmul_dtype"))
def vq_forward(z_e, codebook, *, tile_target=1024, matmul_dtype=None):
    b, c, h, w = z_e.shape
    k, d = codebook.shape
    assert d == c, "code_dimension mismatch"
    hw = h * w

    # Exact f32 cross term while the codebook is small (matches torch argmin);
    # bf16 (f32 accumulation) once the K*C matmul starts to dominate.
    if matmul_dtype is None:
        matmul_dtype = jnp.float32 if (k * c) <= (1 << 16) else jnp.bfloat16

    # In-kernel one-hot gather only while K*D is moderate; otherwise emit
    # indices only and gather with XLA (avoids T*K*D gather FLOPs on the MXU).
    fuse_gather = (k * d) <= (4096 * 256)

    max_tile = _max_tile_hw(hw, c, k, tile_target)
    tile, hwp = _pick_tile_hw(hw, max_tile)
    grid = (b, hwp // tile)

    x = z_e.reshape(b, c, hw)
    if hwp != hw:
        x = jnp.pad(x, ((0, 0), (0, 0), (0, hwp - hw)))  # padded cols trimmed later

    cb_f32 = codebook.astype(jnp.float32)
    cb_mm = cb_f32.astype(matmul_dtype)                               # (K, C)
    cb_t = cb_f32.T                                                   # (C, K)
    c2h = 0.5 * jnp.sum(cb_f32 * cb_f32, axis=1, keepdims=True)       # (K, 1)

    # Single-buffer the grid-invariant codebook operands when they are big
    # enough for the VMEM saving to matter (double-buffering tiny blocks is
    # harmless, so keep the default for small codebooks like the demo).
    cb_kwargs = {"pipeline_mode": pl.Buffered(1)} if (k * c * 4) >= (1 << 20) else {}
    cb_spec = pl.BlockSpec((k, c), lambda bi, ti: (0, 0), **cb_kwargs)
    cbt_spec = pl.BlockSpec((c, k), lambda bi, ti: (0, 0), **cb_kwargs)
    c2_spec = pl.BlockSpec((k, 1), lambda bi, ti: (0, 0), **cb_kwargs)

    x_spec = pl.BlockSpec((1, c, tile), lambda bi, ti: (bi, 0, ti))
    zq_spec = pl.BlockSpec((1, c, tile), lambda bi, ti: (bi, 0, ti))
    idx_spec = pl.BlockSpec((1, 1, tile), lambda bi, ti: (bi, 0, ti))

    kernel = functools.partial(_vq_kernel, matmul_dtype=matmul_dtype,
                               fuse_gather=fuse_gather)

    if fuse_gather:
        in_specs = [x_spec, cb_spec, c2_spec, cbt_spec]
        inputs = (x, cb_mm, c2h, cb_t)
        out_shape = (jax.ShapeDtypeStruct((b, c, hwp), z_e.dtype),
                     jax.ShapeDtypeStruct((b, 1, hwp), jnp.int32))
        out_specs = [zq_spec, idx_spec]
    else:
        in_specs = [x_spec, cb_spec, c2_spec]
        inputs = (x, cb_mm, c2h)
        out_shape = jax.ShapeDtypeStruct((b, 1, hwp), jnp.int32)
        out_specs = idx_spec

    outs = pl.pallas_call(
        kernel,
        out_shape=out_shape,
        grid_spec=pltpu.PrefetchScalarGridSpec(
            num_scalar_prefetch=0,
            grid=grid,
            in_specs=in_specs,
            out_specs=out_specs,
        ),
        compiler_params=pltpu.CompilerParams(
            dimension_semantics=("parallel", "parallel"),
            vmem_limit_bytes=32 * 1024 * 1024,
        ),
    )(*inputs)

    if fuse_gather:
        zq_p, idx_p = outs
        z_q = zq_p[:, :, :hw].reshape(b, c, h, w)
    else:
        idx_p = outs
        gathered = jnp.take(cb_t, idx_p[:, 0, :hw], axis=1)      # (C, B*HW)
        z_q = jnp.moveaxis(gathered.reshape(c, b, hw), 0, 1)
        z_q = z_q.reshape(b, c, h, w).astype(z_e.dtype)

    indices = idx_p[:, 0, :hw].reshape(b, h, w)
    return z_q, indices


class VQCodebookOut(NamedTuple):
    z_e: jax.Array
    z_q: jax.Array
    indices: jax.Array
    z_q_g: Optional[jax.Array] = None


class VQCodebookPallas:
    """JAX/Pallas re-implementation of cflearn VQCodebook.forward."""

    def __init__(self, num_codes: int, code_dimension: int, key):
        self.num_codes = num_codes
        self.code_dimension = code_dimension
        span = 1.0 / num_codes
        # matches nn.Embedding.weight.data.uniform_(-span, span)
        self.embedding_weight = jax.random.uniform(
            key, (num_codes, code_dimension), dtype=jnp.float32,
            minval=-span, maxval=span)

    def forward(self, z_e, *, return_z_q_g: bool = False) -> VQCodebookOut:
        z_q, indices = vq_forward(z_e, self.embedding_weight)
        if not return_z_q_g:
            return VQCodebookOut(z_e, z_q, indices)
        # Spec does `view_as(inp)` on the NHWC-ordered gather, i.e. a raw
        # reshape (no permute back to channel-major).
        z_q_g = jnp.take(self.embedding_weight, indices.reshape(-1), axis=0)
        z_q_g = z_q_g.reshape(z_e.shape)
        return VQCodebookOut(z_e, z_q, indices, z_q_g)


if __name__ == "__main__":
    num_codes, code_dimension = 16, 4
    B, H, W = 2, 16, 16

    key = jax.random.PRNGKey(0)
    k_cb, k_x = jax.random.split(key)

    vq = VQCodebookPallas(num_codes, code_dimension, k_cb)
    z_e = jax.random.normal(k_x, (B, code_dimension, H, W), dtype=jnp.float32)

    z_e_out, z_q, indices, _ = VQCodebookOut(*vq.forward(z_e))
    jax.block_until_ready((z_e_out, z_q, indices))

    # --- sanity checks against a pure-JAX reference ---------------------------
    cb = vq.embedding_weight
    assert z_q.shape == z_e.shape and indices.shape == (B, H, W)
    assert jnp.array_equal(z_e_out, z_e), "z_e passthrough mismatch"
    assert bool(jnp.all((indices >= 0) & (indices < num_codes))), "index out of range"

    # z_q must be exactly the selected codebook rows, in NCHW layout
    zq_from_idx = jnp.transpose(cb[indices], (0, 3, 1, 2))
    assert bool(jnp.allclose(z_q, zq_from_idx, atol=1e-5)), "z_q gather mismatch"

    # chosen codes must be optimal w.r.t. full-f32 distances
    z_flat = jnp.transpose(z_e, (0, 2, 3, 1)).reshape(-1, code_dimension)
    d_all = (jnp.sum(z_flat ** 2, 1, keepdims=True) + jnp.sum(cb ** 2, 1)
             - 2.0 * z_flat @ cb.T)
    d_best = jnp.min(d_all, axis=1)
    d_pick = jnp.take_along_axis(d_all, indices.reshape(-1, 1), axis=1)[:, 0]
    assert bool(jnp.all(d_pick <= d_best + 1e-4)), "argmin not optimal"

    print("KERNEL_OK")
</pallas_src>

<mosaic_0001>
module attributes {stable_mosaic.version = 11 : i64} {
  func.func @_vq_kernel(%arg0: i32, %arg1: i32, %arg2: memref<1x4x256xf32, #tpu.memory_space<vmem>>, %arg3: memref<16x4xf32, #tpu.memory_space<vmem>>, %arg4: memref<16x1xf32, #tpu.memory_space<vmem>>, %arg5: memref<4x16xf32, #tpu.memory_space<vmem>>, %arg6: memref<1x4x256xf32, #tpu.memory_space<vmem>>, %arg7: memref<1x1x256xi32, #tpu.memory_space<vmem>>) attributes {dimension_semantics = [#tpu.dimension_semantics<parallel>, #tpu.dimension_semantics<parallel>], iteration_bounds = array<i64: 2, 1>, scalar_prefetch = 0 : i64, scratch_operands = 0 : i64, tpu.core_type = #tpu.core_type<tc>, window_params = [{transform_indices = @transform_0, window_bounds = array<i64: 1, 4, 256>}, {pipeline_mode = #tpu.pipeline_mode<synchronous>, transform_indices = @transform_1, window_bounds = array<i64: 16, 4>}, {pipeline_mode = #tpu.pipeline_mode<synchronous>, transform_indices = @transform_2, window_bounds = array<i64: 16, 1>}, {pipeline_mode = #tpu.pipeline_mode<synchronous>, transform_indices = @transform_3, window_bounds = array<i64: 4, 16>}, {transform_indices = @transform_4, window_bounds = array<i64: 1, 4, 256>}, {transform_indices = @transform_5, window_bounds = array<i64: 1, 1, 256>}]} {
    %c0 = arith.constant 0 : index
    %c0_0 = arith.constant 0 : index
    %c0_1 = arith.constant 0 : index
    %0 = vector.load %arg2[%c0, %c0_0, %c0_1] : memref<1x4x256xf32, #tpu.memory_space<vmem>>, vector<1x4x256xf32>
    %1 = vector.shape_cast %0 : vector<1x4x256xf32> to vector<4x256xf32>
    %c0_2 = arith.constant 0 : index
    %c0_3 = arith.constant 0 : index
    %2 = vector.load %arg3[%c0_2, %c0_3] : memref<16x4xf32, #tpu.memory_space<vmem>>, vector<16x4xf32>
    %cst = arith.constant dense<0.000000e+00> : vector<16x256xf32>
    %3 = tpu.matmul %2, %1, %cst {dimension_numbers = #tpu.dot_dimension_numbers<[1], [0], [0], [1], [0, 0, 1, 1], [], []>} : vector<16x4xf32>, vector<4x256xf32>, vector<16x256xf32> -> vector<16x256xf32>
    %c0_4 = arith.constant 0 : index
    %c0_5 = arith.constant 0 : index
    %4 = vector.load %arg4[%c0_4, %c0_5] : memref<16x1xf32, #tpu.memory_space<vmem>>, vector<16x1xf32>
    %5 = vector.broadcast %4 : vector<16x1xf32> to vector<16x256xf32>
    %6 = arith.subf %5, %3 : vector<16x256xf32>
    %cst_6 = arith.constant dense<0x7F800000> : vector<256xf32>
    %7 = vector.multi_reduction <minimumf>, %6, %cst_6 [0] : vector<16x256xf32> to vector<256xf32>
    %8 = vector.shape_cast %7 : vector<256xf32> to vector<1x256xf32>
    %9 = tpu.iota {dimensions = array<i32: 0>} : vector<16x256xi32>
    %10 = vector.broadcast %8 : vector<1x256xf32> to vector<16x256xf32>
    %11 = arith.cmpf oeq, %6, %10 : vector<16x256xf32>
    %c16_i32 = arith.constant 16 : i32
    %12 = vector.broadcast %c16_i32 : i32 to vector<16x256xi32>
    %13 = arith.select %11, %9, %12 : vector<16x256xi1>, vector<16x256xi32>
    %cst_7 = arith.constant dense<2147483647> : vector<256xi32>
    %14 = vector.multi_reduction <minsi>, %13, %cst_7 [0] : vector<16x256xi32> to vector<256xi32>
    %15 = vector.shape_cast %14 : vector<256xi32> to vector<1x256xi32>
    %c15_i32 = arith.constant 15 : i32
    %16 = vector.broadcast %c15_i32 : i32 to vector<1x256xi32>
    %17 = arith.minsi %15, %16 : vector<1x256xi32>
    %c0_8 = arith.constant 0 : index
    %c0_9 = arith.constant 0 : index
    %c0_10 = arith.constant 0 : index
    %18 = vector.load %arg7[%c0_8, %c0_9, %c0_10] : memref<1x1x256xi32, #tpu.memory_space<vmem>>, vector<1x1x256xi32>
    %19 = vector.shape_cast %18 : vector<1x1x256xi32> to vector<1x256xi32>
    %20 = vector.shape_cast %17 : vector<1x256xi32> to vector<1x1x256xi32>
    tpu.vector_store %arg7[%c0_8, %c0_9, %c0_10], %20 {strides = array<i32>} : memref<1x1x256xi32, #tpu.memory_space<vmem>>, vector<1x1x256xi32>,
    %21 = vector.broadcast %17 : vector<1x256xi32> to vector<16x256xi32>
    %22 = arith.cmpi eq, %9, %21 : vector<16x256xi32>
    %23 = arith.extui %22 : vector<16x256xi1> to vector<16x256xi32>
    %24 = arith.sitofp %23 : vector<16x256xi32> to vector<16x256xf32>
    %c0_11 = arith.constant 0 : index
    %c0_12 = arith.constant 0 : index
    %25 = vector.load %arg5[%c0_11, %c0_12] : memref<4x16xf32, #tpu.memory_space<vmem>>, vector<4x16xf32>
    %cst_13 = arith.constant dense<0.000000e+00> : vector<4x256xf32>
    %26 = tpu.matmul %25, %24, %cst_13 {dimension_numbers = #tpu.dot_dimension_numbers<[1], [0], [0], [1], [0, 0, 1, 1], [], []>} : vector<4x16xf32>, vector<16x256xf32>, vector<4x256xf32> -> vector<4x256xf32>
    %c0_14 = arith.constant 0 : index
    %c0_15 = arith.constant 0 : index
    %c0_16 = arith.constant 0 : index
    %27 = vector.load %arg6[%c0_14, %c0_15, %c0_16] : memref<1x4x256xf32, #tpu.memory_space<vmem>>, vector<1x4x256xf32>
    %28 = vector.shape_cast %27 : vector<1x4x256xf32> to vector<4x256xf32>
    %29 = vector.shape_cast %26 : vector<4x256xf32> to vector<1x4x256xf32>
    tpu.vector_store %arg6[%c0_14, %c0_15, %c0_16], %29 {strides = array<i32>} : memref<1x4x256xf32, #tpu.memory_space<vmem>>, vector<1x4x256xf32>,
    return
  }
  func.func @transform_0(%arg0: i32, %arg1: i32) -> (i32, i32, i32) {
    %c0_i32 = arith.constant 0 : i32
    %c0_i32_0 = arith.constant 0 : i32
    return %arg0, %c0_i32, %arg1 : i32, i32, i32
  }
  func.func @transform_1(%arg0: i32, %arg1: i32) -> (i32, i32) {
    %c0_i32 = arith.constant 0 : i32
    %c0_i32_0 = arith.constant 0 : i32
    %c0_i32_1 = arith.constant 0 : i32
    return %c0_i32, %c0_i32_0 : i32, i32
  }
  func.func @transform_2(%arg0: i32, %arg1: i32) -> (i32, i32) {
    %c0_i32 = arith.constant 0 : i32
    %c0_i32_0 = arith.constant 0 : i32
    %c0_i32_1 = arith.constant 0 : i32
    return %c0_i32, %c0_i32_0 : i32, i32
  }
  func.func @transform_3(%arg0: i32, %arg1: i32) -> (i32, i32) {
    %c0_i32 = arith.constant 0 : i32
    %c0_i32_0 = arith.constant 0 : i32
    %c0_i32_1 = arith.constant 0 : i32
    return %c0_i32, %c0_i32_0 : i32, i32
  }
  func.func @transform_4(%arg0: i32, %arg1: i32) -> (i32, i32, i32) {
    %c0_i32 = arith.constant 0 : i32
    %c0_i32_0 = arith.constant 0 : i32
    return %arg0, %c0_i32, %arg1 : i32, i32, i32
  }
  func.func @transform_5(%arg0: i32, %arg1: i32) -> (i32, i32, i32) {
    %c0_i32 = arith.constant 0 : i32
    %c0_i32_0 = arith.constant 0 : i32
    return %arg0, %c0_i32, %arg1 : i32, i32, i32
  }
}

</mosaic_0001>

<bundles_post_ra>
// kernel: squeeze.1
= control target key start
LH: loop header
LB: loop body
LE: loop exit
PB: predicated region body
PF: predicated region fallthrough
CT: control target
= control target key end

     0   :  { %s149_s0 = inlined_call_operand.vmem [shape: s32[2,256], index: 0, kind: input, shape index: {}]   ;;  %s150_s1 = inlined_call_operand.hbm [shape: s32[2,16,16], index: 1, kind: output, shape index: {}]  }
   0x1   :  { %v71_v0 = vld [vmem:[%s149_s0 + $0x2] sm:$0x3]  ;;  %v9_v1 = vld [vmem:[%s149_s0] sm:$0x3] }
   0x2   :  { %8 = vst [vmem:[#allocation2 + $0x8] sm:$0x3] %v71_v0  ;;  %10 = vst [vmem:[#allocation2] sm:$0x3] %v9_v1 }
   0x3   :  { %2 = vsyncpa [#allocation1], 0  ;;  %vm12_vm0 = vcmask 130048   ;;  %s104_s0 = smov 112   ;;  %s105_s10 = smov 80  }
   0x4   :  { %s106_s11 = smov 96   ;;  %s107_s12 = smov 64  }
   0x5   :  { %s108_s13 = smov 48   ;;  %s109_s14 = smov 32  }
   0x6   :  { %s110_s15 = smov 16   ;;  %s111_s16 = smov [#allocation0]  }
   0x7   :  { %s65_s17 = sshll.u32 %s111_s16, 4  ;;  %s66_s17 = int_to_ptr.vmem [resolvable:$true] %s65_s17 }
   0x8   :  { %s80_s18 = scalar_lea.vmem %s66_s17, 512  ;;  %p85_p1 = scmp.lt.s32.totalorder %s66_s17, %s66_s17 }
   0x9   :  { %v19_v2 = vld.sshfl [vmem:[#allocation2] sm:$0xff pattern:$0x99999180]   ;;  %p81_p0 = scmp.ne.s32.totalorder %s66_s17, %s80_s18  ;;  %p86_p2 = scmp.lt.s32.totalorder %s80_s18, %s80_s18 }
   0xa   :  { %v11_v3 = vld [vmem:[#allocation2] sm:$0x3]   ;;  %20 = vrot.lane.b32.xlu0 %v19_v2, %s104_s0  ;;  %32 = vrot.lane.b32.xlu1 %v19_v2, %s105_s10  ;;  %v15_v4 = vld [vmem:[#allocation2 + $0x8] sm:$0x3]  }
   0xb   :  { %13 = vst.msk [vmem:[#allocation0] ss:$16 sm:$0x3] %vm12_vm0, %v11_v3   ;;  %18 = vst.msk [vmem:[#allocation0 + $0x8] ss:$16 sm:$0x3] %vm12_vm0, %v15_v4   ;;  %p87_p3 = por %p86_p2, %p85_p1 }
   0xd   :  { %p88_p4 = pnand %p87_p3, %p81_p0 }
   0xe   :  { %26 = vrot.lane.b32.xlu0 %v19_v2, %s106_s11  ;;  %38 = vrot.lane.b32.xlu1 %v19_v2, %s107_s12 }
  0x12   :  { %44 = vrot.lane.b32.xlu0 %v19_v2, %s108_s13  ;;  %50 = vrot.lane.b32.xlu1 %v19_v2, %s109_s14 }
  0x16   :  { %56 = vrot.lane.b32.xlu0 %v19_v2, %s110_s15 }
  0x7c   :  { %v21_v5 = vpop.permute.xlu0 %20   ;;  %v33_v6 = vpop.permute.xlu1 %32  }
  0x7d   :  { %24 = vst.msk [vmem:[#allocation0 + $0x1] ss:$8 sm:$0xf] %vm12_vm0, %v21_v5   ;;  %36 = vst.msk [vmem:[#allocation0 + $0x3] ss:$8 sm:$0xf] %vm12_vm0, %v33_v6  }
  0x80   :  { %v27_v7 = vpop.permute.xlu0 %26   ;;  %v39_v8 = vpop.permute.xlu1 %38  }
  0x81   :  { %30 = vst.msk [vmem:[#allocation0 + $0x2] ss:$8 sm:$0xf] %vm12_vm0, %v27_v7   ;;  %42 = vst.msk [vmem:[#allocation0 + $0x4] ss:$8 sm:$0xf] %vm12_vm0, %v39_v8  }
  0x84   :  { %v45_v9 = vpop.permute.xlu0 %44   ;;  %v51_v10 = vpop.permute.xlu1 %50  }
  0x85   :  { %48 = vst.msk [vmem:[#allocation0 + $0x5] ss:$8 sm:$0xf] %vm12_vm0, %v45_v9   ;;  %54 = vst.msk [vmem:[#allocation0 + $0x6] ss:$8 sm:$0xf] %vm12_vm0, %v51_v10  }
  0x88   :  { %v57_v11 = vpop.permute.xlu0 %56  }
  0x89   :  { %60 = vst.msk [vmem:[#allocation0 + $0x7] ss:$8 sm:$0xf] %vm12_vm0, %v57_v11  }
  0x8a   :  { %91 = shalt.err (!%p88_p4)
}
  0x8b   :  { %s92_s21 = scalar_lea.hbm %s150_s1, 512 }
  0x8c   :  { %p93_p5 = scmp.ne.s32.totalorder %s150_s1, %s92_s21  ;;  %p96_p6 = scmp.lt.u32.totalorder %s92_s21, %s150_s1 }
  0x8e   :  { %p98_p7 = pnand %p96_p6, %p93_p5 }
  0x90   :  { %101 = shalt.err (!%p98_p7)
}
  0x91   :  { %68 = dma.vmem_to_hbm [thread:$0]  %s66_s17, 512, %s150_s1, [#allocation1]  }
  0x92   :  { %102 = dma.done.wait [#allocation1], 512  }
  0x93   :  { %103 = vsyncadd [#allocation1], 4294966784 }
  0x94   :  { %70 = vsyncpa [#allocation1], 1 }

// kernel: vq_forward.1
= control target key start
LH: loop header
LB: loop body
LE: loop exit
PB: predicated region body
PF: predicated region fallthrough
CT: control target
= control target key end

     0   :  { %s810_s18 = smov 0   ;;  %s812_s19 = smov 0   ;;  %s871_s0 = inlined_call_operand.vmem [shape: f32[2,4,256], index: 0, kind: input, shape index: {}]   ;;  %s872_s1 = inlined_call_operand.vmem [shape: f32[16,4], index: 1, kind: input, shape index: {}]   ;;  %s873_s2 = inlined_call_operand.vmem [shape: f32[16,1], index: 2, kind: input, shape index: {}]   ;;  %s874_s3 = inlined_call_operand.vmem [shape: f32[4,16], index: 3, kind: input, shape index: {}]   ;;  %s875_s4 = inlined_call_operand.vmem [shape: f32[2,4,256], index: 4, kind: output, shape index: {0}]   ;;  %s876_s5 = inlined_call_operand.vmem [shape: s32[2,1,256], index: 5, kind: output, shape index: {1}]  }
   0x1   :  { %s814_s20 = smov 0  }
   0x2 LB: > { %s28_s21 = sadd.s32 1, %s770_s19  ;;  %p695_p0 = scmp.ge.s32.totalorder %s774_s20, 1  ;;  %s774_s20 = sphi %s814_s20, %s16_s20   ;;  %s770_s19 = sphi %s812_s19, %s878_s19   ;;  %s766_s18 = sphi %s810_s18, %s877_s18  }
   0x3   : > { %p30_p1 = scmp.ge.s32.totalorder %s28_s21, 2  ;;  %p213_p2 = scmp.lt.s32.totalorder %s774_s20, 3 }
   0x5   : > { %s880_s21 = smov (%p30_p1, %s28_s21), 0  ;;  %p214_p3 = pnand %p695_p0, %p213_p2 }
   0x6   : > { %p258_p4 = scmp.lt.s32.totalorder (!%p214_p3), %s766_s18, 1  ;;  %v776_v0 = vmov (!%p214_p3), 0.0   ;;  %v380_v1 = vld [vmem:[%s873_s2] sm:$0xff] (!%p214_p3)  ;;  %v777_v2 = vmov (!%p214_p3), 0   ;;  %v381_v3 = vld [vmem:[%s873_s2 + $0x8] sm:$0xff] (!%p214_p3)  ;;  %vm298_vm0 = vcmask (!%p214_p3), 1043456   ;;  %v410_v21 = vlaneseq (!%p214_p3) }
   0x7   : > { %217 = sbr.rel (%p214_p3) target bundleno = 495 (0x1ef), region = 36  ;;  %367 = vmatprep.mubr.f32.mxu0 (!%p214_p3), %v776_v0  ;;  %548 = vmatprep.mubr.f32.mxu1 (!%p214_p3), %v776_v0  ;;  %v287_v6 = vld [vmem:[%s872_s1] sm:$0xff] (!%p214_p3)  ;;  %vm291_vm1 = vcmask (!%p214_p3), 31744   ;;  %v288_v7 = vld [vmem:[%s872_s1 + $0x8] sm:$0xff] (!%p214_p3)  ;;  %v778_v47 = vmov (!%p214_p3), 1966171168  }
   0x8   : > { %750 = vset.pattern.permute.xlu0 (!%p214_p3), %v777_v2  ;;  %v411_v26 = vshrl.u32 (!%p214_p3), %v410_v21, 7  ;;  %v449_v48 = vunpack.c.l.s4 (!%p214_p3), %v778_v47  ;;  %v779_v60 = vmov (!%p214_p3), 1.0|1.0   ;;  %v479_v62 = vld [vmem:[%s874_s3] sm:$0xf] (!%p214_p3) }
   0x9   : > { %384 = vperm.xlu0 (!%p214_p3), %750, %v380_v1  }
   0xa   : > { %v412_v31 = vadd.s32 (!%p214_p3), 8, %v411_v26  ;;  %v450_v53 = vunpack.c.0.s8 (!%p214_p3), %v449_v48 }
   0xc   : > { %v453_v57 = vsub.s32 (!%p214_p3), %v450_v53, %v411_v26 }
   0xd   : > { %389 = vperm.xlu0 (!%p214_p3), %750, %v381_v3  }
   0xe   : > { %s882_s18 = smov (!%p258_p4, %s766_s18), 1 }
   0xf   : > { %s716_s24 = sshll.u32 %s882_s18, 3  ;;  %s700_s9 = sshll.u32 %s882_s18, 1 }
  0x10   : > { %s265_s29 = scalar_lea.vmem %s871_s0, %s716_s24  ;;  %s284_s12 = scalar_lea.vmem %s876_s5, %s700_s9 }
  0x11   : > { %v286_v4 = vld [vmem:[%s265_s29] sm:$0xff]  ;;  %s275_s17 = scalar_lea.vmem %s875_s4, %s716_s24 }
  0x12   : > { %v290_v5 = vcombine.high %v286_v4, %v286_v4 }
  0x14   : > { %701 = vmatprep.subr.msk.mxu0 %vm298_vm0, %v290_v5 }
  0x15   : > { %702 = vmatpush1.msk.msra.mxu0 %vm298_vm0, %v286_v4 }
  0x16   : > { %703 = vmatmul.mubr.msk.f32.vlgmr.msra.gmra.mrb[0].mxu0 %vm291_vm1, %v287_v6 }
  0x17   : > { %373 = vmatprep.mubr.f32.mxu0 %v776_v0 }
  0x1a   : > { %704 = vmatmul.mubr.msk.f32.gmra.mrb[2].mxu0 %vm291_vm1, %v288_v7 }
  0x88   : > { %v385_v8 = vpop.permute.xlu0 %384 }
  0x8c   : > { %v390_v11 = vpop.permute.xlu0 %389 }
  0xe9   : > { %v369_v9 = vpop.f32.mrb[0].mxu0 }
  0xea   : > { %v371_v10 = vpop.f32.mrb[1].mxu0  ;;  %v392_v13 = vsub.f32 %v385_v8, %v369_v9 }
  0xeb   : > { %v393_v16 = vsub.f32 %v385_v8, %v371_v10 }
  0xed   : > { %v375_v12 = vpop.f32.mrb[2].mxu0 }
  0xee   : > { %v394_v14 = vsub.f32 %v390_v11, %v375_v12  ;;  %v377_v15 = vpop.f32.mrb[3].mxu0 }
  0xef   : > { %v395_v17 = vsub.f32 %v390_v11, %v377_v15 }
  0xf0   : > { %v396_v18 = vmin.f32 %v392_v13, %v394_v14 }
  0xf1   : > { %v403_v19 = vmin.f32 %v393_v16, %v395_v17 }
  0xf2   : > { %v397_v20 = vrot.slane %v396_v18, 4 }
  0xf3   : > { %v404_v22 = vrot.slane %v403_v19, 4 }
  0xf4   : > { %v398_v23 = vmin.f32 %v396_v18, %v397_v20 }
  0xf5   : > { %v405_v24 = vmin.f32 %v403_v19, %v404_v22 }
  0xf6   : > { %v399_v25 = vrot.slane %v398_v23, 2 }
  0xf7   : > { %v406_v27 = vrot.slane %v405_v24, 2 }
  0xf8   : > { %v400_v28 = vmin.f32 %v398_v23, %v399_v25 }
  0xf9   : > { %v407_v29 = vmin.f32 %v405_v24, %v406_v27 }
  0xfa   : > { %v401_v30 = vrot.slane %v400_v28, 1 }
  0xfb   : > { %v408_v32 = vrot.slane %v407_v29, 1 }
  0xfc   : > { %v402_v33 = vmin.f32 %v400_v28, %v401_v30 }
  0xfd   : > { %v409_v34 = vmin.f32 %v407_v29, %v408_v32 }
  0xfe   : > { %vm413_vm2 = vcmp.eq.f32.partialorder %v392_v13, %v402_v33  ;;  %vm415_vm3 = vcmp.eq.f32.partialorder %v394_v14, %v402_v33 }
  0xff   : > { %v417_v35 = vsel %vm413_vm2, %v411_v26, 16  ;;  %v419_v36 = vsel %vm415_vm3, %v412_v31, 16  ;;  %vm414_vm4 = vcmp.eq.f32.partialorder %v393_v16, %v409_v34  ;;  %vm416_vm5 = vcmp.eq.f32.partialorder %v395_v17, %v409_v34 }
 0x100   : > { %vm421_vm6 = vcmp.lt.s32.totalorder %v417_v35, %v419_v36  ;;  %v418_v37 = vsel %vm414_vm4, %v411_v26, 16  ;;  %v420_v38 = vsel %vm416_vm5, %v412_v31, 16 }
 0x101   : > { %v422_v39 = vsel %vm421_vm6, %v417_v35, %v419_v36  ;;  %vm432_vm7 = vcmp.lt.s32.totalorder %v418_v37, %v420_v38  ;;  %vm464_vm6 = vcmp.lt.s32.totalorder %v410_v21, 256 }
 0x102   : > { %v423_v40 = vrot.slane %v422_v39, 4  ;;  %v433_v41 = vsel %vm432_vm7, %v418_v37, %v420_v38  ;;  %vm480_vm7 = vcmask 130048  }
 0x103   : > { %v434_v42 = vrot.slane %v433_v41, 4 }
 0x104   : > { %vm424_vm8 = vcmp.lt.s32.totalorder %v422_v39, %v423_v40 }
 0x105   : > { %v425_v43 = vsel %vm424_vm8, %v422_v39, %v423_v40  ;;  %vm435_vm9 = vcmp.lt.s32.totalorder %v433_v41, %v434_v42 }
 0x106   : > { %v426_v44 = vrot.slane %v425_v43, 2  ;;  %v436_v45 = vsel %vm435_vm9, %v433_v41, %v434_v42 }
 0x107   : > { %v437_v46 = vrot.slane %v436_v45, 2 }
 0x108   : > { %vm427_vm10 = vcmp.lt.s32.totalorder %v425_v43, %v426_v44 }
 0x109   : > { %vm438_vm11 = vcmp.lt.s32.totalorder %v436_v45, %v437_v46  ;;  %v428_v49 = vsel %vm427_vm10, %v425_v43, %v426_v44 }
 0x10a   : > { %v439_v50 = vsel %vm438_vm11, %v436_v45, %v437_v46  ;;  %v429_v51 = vrot.slane %v428_v49, 1 }
 0x10b   : > { %v440_v52 = vrot.slane %v439_v50, 1 }
 0x10c   : > { %vm430_vm12 = vcmp.lt.s32.totalorder %v428_v49, %v429_v51 }
 0x10d   : > { %vm441_vm13 = vcmp.lt.s32.totalorder %v439_v50, %v440_v52  ;;  %v431_v54 = vsel %vm430_vm12, %v428_v49, %v429_v51 }
 0x10e   : > { %v442_v55 = vsel %vm441_vm13, %v439_v50, %v440_v52  ;;  %vm443_vm14 = vcmp.lt.s32.totalorder %v431_v54, 15 }
 0x10f   : > { %vm445_vm15 = vcmp.lt.s32.totalorder %v442_v55, 15  ;;  %v444_v56 = vsel %vm443_vm14, %v431_v54, 15 }
 0x110   : > { %v446_v58 = vsel %vm445_vm15, %v442_v55, 15  ;;  %vm467_vm0 = vcmp.eq.s32.totalorder %v411_v26, %v444_v56  ;;  %vm469_vm1 = vcmp.eq.s32.totalorder %v412_v31, %v444_v56 }
 0x111   : > { %vm468_vm2 = vcmp.eq.s32.totalorder %v411_v26, %v446_v58  ;;  %vm470_vm3 = vcmp.eq.s32.totalorder %v412_v31, %v446_v58  ;;  %v447_v59 = vcombine.low %v444_v56, %v446_v58  ;;  %vm720_vm5 = vmpackc.low %vm469_vm1, %vm467_vm0 }
 0x112   : > { %vm718_vm4 = vmpackc.low %vm470_vm3, %vm468_vm2 }
 0x113   : > { %719 = vmatprep.subr.msk.bf16.mxu1 %vm718_vm4, %v779_v60  ;;  %v454_v61 = vrot.slane %v447_v59, %v453_v57 }
 0x114   : > { %721 = vmatpush1.bf16.msk.msra.mxu1 %vm720_vm5, %v779_v60 }
 0x115   : > { %v461_v63 = vrot.slane %v454_v61, %v453_v57 }
 0x117   : > { %466 = vst.msk [vmem:[%s284_s12] sm:$0x3] %vm464_vm6, %v461_v63  ;;  %713 = vmatmul.mubr.msk.f32.vlgmr.msra.gmra.mrb[0].mxu1 %vm480_vm7, %v479_v62 }
 0x1ea   : > { %v550_v0 = vpop.f32.mrb[0].mxu1 }
 0x1eb   : > { %v552_v1 = vpop.f32.mrb[1].mxu1 }
 0x1ec   : > { %v557_v2 = vcombine.low %v550_v0, %v552_v1 }
 0x1ee   : > { %559 = vst [vmem:[%s275_s17] sm:$0xff] %v557_v2 }
 0x1ef PF: > { %s16_s20 = sadd.s32 1, %s774_s20   ;;  %s877_s18 = smov %s770_s19 }
 0x1f0   : > { %p13_p5 = scmp.ge.s32.totalorder %s16_s20, 4   ;;  %s878_s19 = smov %s880_s21 }
 0x1f2   :  { %15 = sbr.rel (!%p13_p5) target bundleno = 2 (0x2), region = 78 }

</bundles_post_ra>
